<compile_context>
chip_gen: v7x
topology: tpu7x:2x2x1
jax: 0.10.0
libtpu: 0.0.40
codegen_flags: <defaults>
</compile_context>

<pallas_src>
import functools
import math

import jax
import jax.numpy as jnp
from jax import lax
from jax.experimental import pallas as pl
from jax.experimental.pallas import tpu as pltpu

_LANE = 128
_SUBLANE = 8
_MIB = 1024 * 1024


def ceil_log2(l):
    return int(math.ceil(math.log2(l)))


def binary_position_bits(l, seq_len):
    """LSB-first binary position code in {-0.5, +0.5}, shape (seq_len, ceil_log2(l))."""
    pelen = ceil_log2(l)
    if pelen == 0:                                   # l == 1 edge case
        return jnp.zeros((seq_len, 0), jnp.float32)
    code = jnp.arange(l, dtype=jnp.float32)          # torch.range(0, l-1)
    cols = []
    for _ in range(pelen):
        cols.append(code % 2.0)
        code = jnp.floor(code / 2.0)                 # torch float // 2
    bits = jnp.stack(cols, axis=-1) - 0.5            # (l, pelen)
    return bits[:seq_len].astype(jnp.float32)


# --------------------------------------------------------------------------- #
# Resource sizing
# --------------------------------------------------------------------------- #
def _vmem_limit_bytes():
    """Per-generation VMEM limit: leave headroom on 64 MiB parts (v7x)."""
    cap = None
    try:
        cap = getattr(pltpu.get_tpu_info(), "vmem_capacity_bytes", None)
    except Exception:
        cap = None
    if cap is None:
        cap = 64 * _MIB                        # conservative (v7x-sized) default
    if cap <= 64 * _MIB:
        return 42 * _MIB                       # v7x: 64 MiB physical
    return 96 * _MIB                           # v5e / v6e: 128 MiB physical


def _rup(n, m):
    return ((n + m - 1) // m) * m


def _tile_bytes(rows, cols, itemsize):
    return _rup(max(rows, 1), _SUBLANE) * _rup(max(cols, 1), _LANE) * itemsize


def _vmem_estimate(bb, ck, L, E, dk, dout, x_bytes, w_bytes):
    """Rough per-grid-step VMEM footprint (lane/sublane padding included)."""
    f32 = 4
    total = 0
    total += 2 * bb * _tile_bytes(ck, E, x_bytes)           # x chunk (double-buffered)
    total += 2 * bb * _tile_bytes(L, dout, f32)             # out block (double-buffered)
    total += bb * _tile_bytes(L, dout, f32)                 # acc scratch
    total += 2 * _tile_bytes(bb, L, f32)                    # m / l scratch
    # constant parameter blocks (worst case: double-buffered fallback)
    total += 2 * (_tile_bytes(L, dk, w_bytes) + _tile_bytes(E, dk, w_bytes)
                  + _tile_bytes(E, dout, w_bytes) + 3 * _tile_bytes(1, dout, f32))
    # in-kernel intermediates: K, V, scores, probs, PV (+ bf16 copies)
    inter = (bb * _tile_bytes(ck, dk, f32) + bb * _tile_bytes(ck, dout, f32)
             + 2 * bb * _tile_bytes(L, ck, f32) + bb * _tile_bytes(L, dout, f32))
    if w_bytes == 2:
        inter += bb * (_tile_bytes(ck, dk, 2) + _tile_bytes(ck, dout, 2)
                       + _tile_bytes(L, ck, 2))
    total += inter
    return int(total * 1.25)                                # compiler-scratch fudge


def _choose_blocks(B, L, E, dk, dout, budget, x_bytes, w_bytes,
                   block_b=None, kv_chunk=None):
    """Pick (block_b, kv_chunk) that fit the VMEM budget; prefer even parallel steps."""
    bb_cands = ([block_b] if block_b is not None
                else [b for b in (8, 4, 2, 1) if b <= B and B % b == 0])
    ck_cands = ([kv_chunk] if kv_chunk is not None
                else [L] + [c for c in (2048, 1024, 512, 256, 128)
                            if c < L and L % c == 0])
    best = None
    for bb in bb_cands:
        for ck in ck_cands:
            if L % ck or (ck != L and ck % _SUBLANE):
                continue
            if _vmem_estimate(bb, ck, L, E, dk, dout, x_bytes, w_bytes) > budget:
                continue
            even_steps = (B // bb) % 2 == 0        # keep both v7x TensorCores busy
            key = (even_steps, bb * ck, ck)        # then minimize total grid steps
            if best is None or key > best[0]:
                best = (key, bb, ck)
    if best is not None:
        return best[1], best[2]
    # Nothing fit the estimate: fall back to the smallest footprint and let the
    # compiler report a real error if it still does not fit.
    bb = 1 if block_b is None else block_b
    if kv_chunk is not None:
        ck = kv_chunk
    else:
        ck = min([c for c in (128, 256, 512) if L % c == 0], default=L)
    return bb, ck


# --------------------------------------------------------------------------- #
# Kernel
# --------------------------------------------------------------------------- #
def _pos_decoder_kernel(x_ref, q_ref, wk_ref, wv_ref, bv_ref, gamma_ref, beta_ref,
                        o_ref, m_sc, l_sc, acc_sc, *, eps, mxu_dtype):
    kv = pl.program_id(1)

    @pl.when(kv == 0)
    def _init():
        m_sc[...] = jnp.full_like(m_sc, -jnp.inf)
        l_sc[...] = jnp.zeros_like(l_sc)
        acc_sc[...] = jnp.zeros_like(acc_sc)

    bt, ck, E = x_ref.shape

    x2 = x_ref[...].reshape(bt * ck, E)          # bf16 already (wrapper-side cast)
    q = q_ref[...]                               # (L, d_ker), 1/sqrt(d_ker) pre-folded
    wk = wk_ref[...]
    wv = wv_ref[...]

    # K / V projections for this KV chunk (fp32 accumulation on the MXU).
    # NOTE: the K bias is dropped on purpose: Q·bk is constant along the key axis,
    # so the row-softmax is invariant to it.
    k = jnp.dot(x2, wk, preferred_element_type=jnp.float32).reshape(bt, ck, -1)
    v = (jnp.dot(x2, wv, preferred_element_type=jnp.float32)
         + bv_ref[...]).reshape(bt, ck, -1)

    if mxu_dtype is not None:
        k = k.astype(mxu_dtype)
        v_mm = v.astype(mxu_dtype)
    else:
        v_mm = v

    # Scores (bt, L, ck): per batch element, Q @ K_b^T.  Q is never broadcast to
    # bt copies; the shared operand is reused across the static batch loop, and
    # each dot is a transpose-free contraction over the last dim.
    s = jnp.stack(
        [jnp.einsum("qd,kd->qk", q, k[b], preferred_element_type=jnp.float32)
         for b in range(bt)],
        axis=0)

    # Online softmax update (exact softmax once all KV chunks are accumulated).
    m_prev = m_sc[...]                                      # (bt, L)
    m_new = jnp.maximum(m_prev, jnp.max(s, axis=-1))
    alpha = jnp.exp(m_prev - m_new)                         # 0 on the first chunk
    p = jnp.exp(s - m_new[..., None])                       # (bt, L, ck)
    l_sc[...] = alpha * l_sc[...] + jnp.sum(p, axis=-1)
    p_mm = p.astype(mxu_dtype) if mxu_dtype is not None else p
    pv = jnp.einsum("bqk,bkd->bqd", p_mm, v_mm, preferred_element_type=jnp.float32)
    acc_sc[...] = alpha[..., None] * acc_sc[...] + pv
    m_sc[...] = m_new

    @pl.when(kv == pl.num_programs(1) - 1)
    def _finalize():
        # Softmax normalization (EUP approx reciprocal) + LayerNorm over dout.
        y = acc_sc[...] * pl.reciprocal(l_sc[...], approx=True)[..., None]
        mean = jnp.mean(y, axis=-1, keepdims=True)
        c = y - mean
        var = jnp.mean(c * c, axis=-1, keepdims=True)
        y_hat = c * lax.rsqrt(var + eps)
        o_ref[...] = (y_hat * gamma_ref[...] + beta_ref[...]).astype(o_ref.dtype)


# --------------------------------------------------------------------------- #
# Wrapper
# --------------------------------------------------------------------------- #
def positional_decoder(x, params, l, *, block_b=None, kv_chunk=None,
                       use_bf16_matmul=True):
    """x: (B, L, E) float32.  Returns (B, L, dout) float32."""
    B, L, E = x.shape
    d_ker = params["wq"].shape[1]
    dout = params["wv"].shape[1]

    if block_b is not None and B % block_b:
        raise ValueError("block_b must divide the batch size")
    if kv_chunk is not None and (L % kv_chunk
                                 or (kv_chunk != L and kv_chunk % _SUBLANE)):
        raise ValueError("kv_chunk must divide L and be a multiple of 8 (or equal L)")

    # ---- hoisted, batch-invariant Q projection (1/sqrt(d_ker) folded in) ----
    bits = binary_position_bits(l, L)                              # (L, pelen)
    q = ((bits @ params["wq"] + params["bq"]) / math.sqrt(d_ker)).astype(jnp.float32)

    # ---- wrapper-side MXU-operand casts (halve x DMA bytes, no in-kernel passes) ----
    mxu_dtype = jnp.bfloat16 if use_bf16_matmul else None
    op_dtype = jnp.bfloat16 if use_bf16_matmul else jnp.float32
    x_mm = x.astype(op_dtype)
    q_mm = q.astype(op_dtype)
    wk = params["wk"].astype(op_dtype)
    wv = params["wv"].astype(op_dtype)
    bv = params["bv"].reshape(1, dout).astype(jnp.float32)
    gamma = params["gamma"].reshape(1, dout).astype(jnp.float32)
    beta = params["beta"].reshape(1, dout).astype(jnp.float32)

    # ---- VMEM-aware block sizing + per-generation VMEM limit ----
    vmem_limit = _vmem_limit_bytes()
    budget = int(vmem_limit * 0.7)
    itemsize = jnp.dtype(op_dtype).itemsize
    bb, ck = _choose_blocks(B, L, E, d_ker, dout, budget, itemsize, itemsize,
                            block_b=block_b, kv_chunk=kv_chunk)

    grid = (B // bb, L // ck)        # (parallel batch blocks, KV accumulation axis)
    kernel = functools.partial(_pos_decoder_kernel, eps=1e-5, mxu_dtype=mxu_dtype)

    def build(single_buffer_consts):
        def const_spec(shape):
            ndim = len(shape)
            idx = lambda b, kv: (0,) * ndim
            if single_buffer_consts:
                # Constant-index blocks don't need double buffering.
                return pl.BlockSpec(shape, idx, pipeline_mode=pl.Buffered(1))
            return pl.BlockSpec(shape, idx)

        return pl.pallas_call(
            kernel,
            out_shape=jax.ShapeDtypeStruct((B, L, dout), jnp.float32),
            grid_spec=pltpu.PrefetchScalarGridSpec(
                num_scalar_prefetch=0,
                grid=grid,
                in_specs=[
                    pl.BlockSpec((bb, ck, E), lambda b, kv: (b, kv, 0)),   # x chunk
                    const_spec((L, d_ker)),     # Q (pre-scaled, batch-invariant)
                    const_spec((E, d_ker)),     # Wk
                    const_spec((E, dout)),      # Wv
                    const_spec((1, dout)),      # bv
                    const_spec((1, dout)),      # gamma
                    const_spec((1, dout)),      # beta
                ],
                out_specs=pl.BlockSpec((bb, L, dout), lambda b, kv: (b, 0, 0)),
                scratch_shapes=[
                    pltpu.VMEM((bb, L), jnp.float32),         # running max
                    pltpu.VMEM((bb, L), jnp.float32),         # running denominator
                    pltpu.VMEM((bb, L, dout), jnp.float32),   # running numerator
                ],
            ),
            compiler_params=pltpu.CompilerParams(
                dimension_semantics=("parallel", "arbitrary"),
                vmem_limit_bytes=vmem_limit),
        )

    args = (x_mm, q_mm, wk, wv, bv, gamma, beta)
    try:
        out = build(True)(*args)        # single-buffered constant parameter blocks
    except (TypeError, ValueError, NotImplementedError, pltpu.LoweringException):
        # Narrow fallback: only retried for pl.Buffered(1) incompatibility; any
        # failure that persists re-raises from the double-buffered build below.
        out = build(False)(*args)
    return out


# --------------------------------------------------------------------------- #
# Params / reference
# --------------------------------------------------------------------------- #
def init_params(key, embed_dim, l, dout):
    pelen = ceil_log2(l)
    d_ker = embed_dim
    ks = jax.random.split(key, 6)
    scale = 0.1
    return {
        "wq": scale * jax.random.normal(ks[0], (pelen, d_ker), jnp.float32),
        "bq": scale * jax.random.normal(ks[1], (d_ker,), jnp.float32),
        "wk": scale * jax.random.normal(ks[2], (embed_dim, d_ker), jnp.float32),
        "bk": scale * jax.random.normal(ks[3], (d_ker,), jnp.float32),
        "wv": scale * jax.random.normal(ks[4], (embed_dim, dout), jnp.float32),
        "bv": scale * jax.random.normal(ks[5], (dout,), jnp.float32),
        "gamma": jnp.ones((dout,), jnp.float32),
        "beta": jnp.zeros((dout,), jnp.float32),
    }


def reference(x, params, l):
    """Pure-JAX reference of the module forward pass (exact softmax, keeps bk)."""
    B, L, E = x.shape
    d_ker = params["wq"].shape[1]
    bits = binary_position_bits(l, L)                               # (L, pelen)
    q = bits @ params["wq"] + params["bq"]                          # (L, d_ker)
    k = jnp.einsum("ble,ed->bld", x, params["wk"]) + params["bk"]
    v = jnp.einsum("ble,ed->bld", x, params["wv"]) + params["bv"]
    s = jnp.einsum("qd,bkd->bqk", q, k) / jnp.sqrt(jnp.float32(d_ker))
    p = jax.nn.softmax(s, axis=-1)
    y = jnp.einsum("bqk,bkd->bqd", p, v)
    mean = jnp.mean(y, axis=-1, keepdims=True)
    var = jnp.mean((y - mean) ** 2, axis=-1, keepdims=True)
    return (y - mean) / jnp.sqrt(var + 1e-5) * params["gamma"] + params["beta"]


if __name__ == "__main__":
    key = jax.random.PRNGKey(0)
    kx1, kp1, kx2, kp2 = jax.random.split(key, 4)

    # ---- Test 1: module-default small shapes, strict fp32 MXU path ----
    B, L, embed_dim = 2, 8, 32
    l = 8                       # max sequence length -> pelen = 3
    dout = embed_dim            # LayerNorm(embed_dim) forces dout == embed_dim
    x = jax.random.normal(kx1, (B, L, embed_dim), jnp.float32)
    params = init_params(kp1, embed_dim, l, dout)
    ref = reference(x, params, l)

    out_fp32 = jax.block_until_ready(
        positional_decoder(x, params, l, use_bf16_matmul=False))
    assert out_fp32.shape == (B, L, dout)
    err = float(jnp.max(jnp.abs(out_fp32 - ref)))
    assert err < 2e-3, f"fp32 path mismatch vs reference: max abs err = {err}"

    # ---- Test 2: default bf16 MXU-operand path (fp32 accumulation) ----
    out_bf16 = jax.block_until_ready(positional_decoder(x, params, l))
    err = float(jnp.max(jnp.abs(out_bf16 - ref)))
    assert err < 5e-2, f"bf16 path mismatch vs reference: max abs err = {err}"

    # ---- Test 3: exercise online-softmax KV tiling (multiple KV chunks) ----
    L2, l2 = 16, 16
    x2 = jax.random.normal(kx2, (B, L2, embed_dim), jnp.float32)
    params2 = init_params(kp2, embed_dim, l2, dout)
    ref2 = reference(x2, params2, l2)
    out2 = jax.block_until_ready(
        positional_decoder(x2, params2, l2, use_bf16_matmul=False, kv_chunk=8))
    err = float(jnp.max(jnp.abs(out2 - ref2)))
    assert err < 2e-3, f"KV-tiled path mismatch vs reference: max abs err = {err}"

    print("KERNEL_OK")
</pallas_src>

<mosaic_0001>
module attributes {stable_mosaic.version = 11 : i64} {
  func.func @_pos_decoder_kernel(%arg0: i32, %arg1: i32, %arg2: memref<1x8x32xf32, #tpu.memory_space<vmem>>, %arg3: memref<8x32xf32, #tpu.memory_space<vmem>>, %arg4: memref<32x32xf32, #tpu.memory_space<vmem>>, %arg5: memref<32x32xf32, #tpu.memory_space<vmem>>, %arg6: memref<1x32xf32, #tpu.memory_space<vmem>>, %arg7: memref<1x32xf32, #tpu.memory_space<vmem>>, %arg8: memref<1x32xf32, #tpu.memory_space<vmem>>, %arg9: memref<1x8x32xf32, #tpu.memory_space<vmem>>, %arg10: memref<1x8xf32, #tpu.memory_space<vmem>>, %arg11: memref<1x8xf32, #tpu.memory_space<vmem>>, %arg12: memref<1x8x32xf32, #tpu.memory_space<vmem>>) attributes {dimension_semantics = [#tpu.dimension_semantics<parallel>, #tpu.dimension_semantics<arbitrary>], iteration_bounds = array<i64: 2, 1>, scalar_prefetch = 0 : i64, scratch_operands = 3 : i64, tpu.core_type = #tpu.core_type<tc>, window_params = [{transform_indices = @transform_0, window_bounds = array<i64: 1, 8, 32>}, {pipeline_mode = #tpu.pipeline_mode<synchronous>, transform_indices = @transform_1, window_bounds = array<i64: 8, 32>}, {pipeline_mode = #tpu.pipeline_mode<synchronous>, transform_indices = @transform_2, window_bounds = array<i64: 32, 32>}, {pipeline_mode = #tpu.pipeline_mode<synchronous>, transform_indices = @transform_3, window_bounds = array<i64: 32, 32>}, {pipeline_mode = #tpu.pipeline_mode<synchronous>, transform_indices = @transform_4, window_bounds = array<i64: 1, 32>}, {pipeline_mode = #tpu.pipeline_mode<synchronous>, transform_indices = @transform_5, window_bounds = array<i64: 1, 32>}, {pipeline_mode = #tpu.pipeline_mode<synchronous>, transform_indices = @transform_6, window_bounds = array<i64: 1, 32>}, {transform_indices = @transform_7, window_bounds = array<i64: 1, 8, 32>}]} {
    %c0_i32 = arith.constant 0 : i32
    %0 = arith.cmpi eq, %arg1, %c0_i32 : i32
    %1 = arith.extui %0 : i1 to i32
    %c0_i32_0 = arith.constant 0 : i32
    %2 = arith.cmpi ne, %1, %c0_i32_0 : i32
    scf.if %2 {
      %cst_32 = arith.constant 0xFF800000 : f32
      %43 = vector.broadcast %cst_32 : f32 to vector<1x8xf32>
      %c0_33 = arith.constant 0 : index
      %c0_34 = arith.constant 0 : index
      %44 = vector.load %arg10[%c0_33, %c0_34] : memref<1x8xf32, #tpu.memory_space<vmem>>, vector<1x8xf32>
      tpu.vector_store %arg10[%c0_33, %c0_34], %43 {strides = array<i32>} : memref<1x8xf32, #tpu.memory_space<vmem>>, vector<1x8xf32>,
      %cst_35 = arith.constant 0.000000e+00 : f32
      %45 = vector.broadcast %cst_35 : f32 to vector<1x8xf32>
      %c0_36 = arith.constant 0 : index
      %c0_37 = arith.constant 0 : index
      %46 = vector.load %arg11[%c0_36, %c0_37] : memref<1x8xf32, #tpu.memory_space<vmem>>, vector<1x8xf32>
      tpu.vector_store %arg11[%c0_36, %c0_37], %45 {strides = array<i32>} : memref<1x8xf32, #tpu.memory_space<vmem>>, vector<1x8xf32>,
      %cst_38 = arith.constant 0.000000e+00 : f32
      %47 = vector.broadcast %cst_38 : f32 to vector<1x8x32xf32>
      %c0_39 = arith.constant 0 : index
      %c0_40 = arith.constant 0 : index
      %c0_41 = arith.constant 0 : index
      %48 = vector.load %arg12[%c0_39, %c0_40, %c0_41] : memref<1x8x32xf32, #tpu.memory_space<vmem>>, vector<1x8x32xf32>
      tpu.vector_store %arg12[%c0_39, %c0_40, %c0_41], %47 {strides = array<i32>} : memref<1x8x32xf32, #tpu.memory_space<vmem>>, vector<1x8x32xf32>,
    } else {
    }
    %c0 = arith.constant 0 : index
    %c0_1 = arith.constant 0 : index
    %c0_2 = arith.constant 0 : index
    %3 = vector.load %arg2[%c0, %c0_1, %c0_2] : memref<1x8x32xf32, #tpu.memory_space<vmem>>, vector<1x8x32xf32>
    %4 = vector.shape_cast %3 : vector<1x8x32xf32> to vector<8x32xf32>
    %c0_3 = arith.constant 0 : index
    %c0_4 = arith.constant 0 : index
    %5 = vector.load %arg3[%c0_3, %c0_4] : memref<8x32xf32, #tpu.memory_space<vmem>>, vector<8x32xf32>
    %c0_5 = arith.constant 0 : index
    %c0_6 = arith.constant 0 : index
    %6 = vector.load %arg4[%c0_5, %c0_6] : memref<32x32xf32, #tpu.memory_space<vmem>>, vector<32x32xf32>
    %c0_7 = arith.constant 0 : index
    %c0_8 = arith.constant 0 : index
    %7 = vector.load %arg5[%c0_7, %c0_8] : memref<32x32xf32, #tpu.memory_space<vmem>>, vector<32x32xf32>
    %cst = arith.constant dense<0.000000e+00> : vector<8x32xf32>
    %8 = tpu.matmul %4, %6, %cst {dimension_numbers = #tpu.dot_dimension_numbers<[1], [0], [0], [1], [0, 0, 1, 1], [], []>} : vector<8x32xf32>, vector<32x32xf32>, vector<8x32xf32> -> vector<8x32xf32>
    %9 = vector.shape_cast %8 : vector<8x32xf32> to vector<1x8x32xf32>
    %cst_9 = arith.constant dense<0.000000e+00> : vector<8x32xf32>
    %10 = tpu.matmul %4, %7, %cst_9 {dimension_numbers = #tpu.dot_dimension_numbers<[1], [0], [0], [1], [0, 0, 1, 1], [], []>} : vector<8x32xf32>, vector<32x32xf32>, vector<8x32xf32> -> vector<8x32xf32>
    %c0_10 = arith.constant 0 : index
    %c0_11 = arith.constant 0 : index
    %11 = vector.load %arg6[%c0_10, %c0_11] : memref<1x32xf32, #tpu.memory_space<vmem>>, vector<1x32xf32>
    %12 = vector.broadcast %11 : vector<1x32xf32> to vector<8x32xf32>
    %13 = arith.addf %10, %12 : vector<8x32xf32>
    %14 = vector.shape_cast %13 : vector<8x32xf32> to vector<1x8x32xf32>
    %15 = vector.shape_cast %9 : vector<1x8x32xf32> to vector<8x32xf32>
    "tpu.trace_start"() <{level = 10 : i32, message = "qd,kd->qk"}> : () -> ()
    %cst_12 = arith.constant dense<0.000000e+00> : vector<8x8xf32>
    %16 = tpu.matmul %5, %15, %cst_12 {dimension_numbers = #tpu.dot_dimension_numbers<[1], [1], [0], [0], [0, 0, 1, 0], [], []>} : vector<8x32xf32>, vector<8x32xf32>, vector<8x8xf32> -> vector<8x8xf32>
    "tpu.trace_stop"() : () -> ()
    %17 = vector.shape_cast %16 : vector<8x8xf32> to vector<1x8x8xf32>
    %c0_13 = arith.constant 0 : index
    %c0_14 = arith.constant 0 : index
    %18 = vector.load %arg10[%c0_13, %c0_14] : memref<1x8xf32, #tpu.memory_space<vmem>>, vector<1x8xf32>
    %cst_15 = arith.constant dense<0xFF800000> : vector<1x8xf32>
    %19 = vector.multi_reduction <maximumf>, %17, %cst_15 [2] : vector<1x8x8xf32> to vector<1x8xf32>
    %20 = arith.maximumf %18, %19 : vector<1x8xf32>
    %21 = arith.subf %18, %20 : vector<1x8xf32>
    %22 = math.exp %21 : vector<1x8xf32>
    %23 = vector.shape_cast %20 : vector<1x8xf32> to vector<1x8x1xf32>
    %24 = vector.broadcast %23 : vector<1x8x1xf32> to vector<1x8x8xf32>
    %25 = arith.subf %17, %24 : vector<1x8x8xf32>
    %26 = math.exp %25 : vector<1x8x8xf32>
    %c0_16 = arith.constant 0 : index
    %c0_17 = arith.constant 0 : index
    %27 = vector.load %arg11[%c0_16, %c0_17] : memref<1x8xf32, #tpu.memory_space<vmem>>, vector<1x8xf32>
    %28 = arith.mulf %22, %27 : vector<1x8xf32>
    %cst_18 = arith.constant dense<0.000000e+00> : vector<1x8xf32>
    %29 = vector.multi_reduction <add>, %26, %cst_18 [2] : vector<1x8x8xf32> to vector<1x8xf32>
    %30 = arith.addf %28, %29 : vector<1x8xf32>
    %c0_19 = arith.constant 0 : index
    %c0_20 = arith.constant 0 : index
    %31 = vector.load %arg11[%c0_19, %c0_20] : memref<1x8xf32, #tpu.memory_space<vmem>>, vector<1x8xf32>
    tpu.vector_store %arg11[%c0_19, %c0_20], %30 {strides = array<i32>} : memref<1x8xf32, #tpu.memory_space<vmem>>, vector<1x8xf32>,
    "tpu.trace_start"() <{level = 10 : i32, message = "bqk,bkd->bqd"}> : () -> ()
    %cst_21 = arith.constant dense<0.000000e+00> : vector<1x8x32xf32>
    %32 = tpu.matmul %26, %14, %cst_21 {dimension_numbers = #tpu.dot_dimension_numbers<[2], [1], [1], [2], [0, 0, 0, 1, 1, 2], [0], [0]>} : vector<1x8x8xf32>, vector<1x8x32xf32>, vector<1x8x32xf32> -> vector<1x8x32xf32>
    "tpu.trace_stop"() : () -> ()
    %33 = vector.shape_cast %22 : vector<1x8xf32> to vector<1x8x1xf32>
    %c0_22 = arith.constant 0 : index
    %c0_23 = arith.constant 0 : index
    %c0_24 = arith.constant 0 : index
    %34 = vector.load %arg12[%c0_22, %c0_23, %c0_24] : memref<1x8x32xf32, #tpu.memory_space<vmem>>, vector<1x8x32xf32>
    %35 = vector.broadcast %33 : vector<1x8x1xf32> to vector<1x8x32xf32>
    %36 = arith.mulf %35, %34 : vector<1x8x32xf32>
    %37 = arith.addf %36, %32 : vector<1x8x32xf32>
    %c0_25 = arith.constant 0 : index
    %c0_26 = arith.constant 0 : index
    %c0_27 = arith.constant 0 : index
    %38 = vector.load %arg12[%c0_25, %c0_26, %c0_27] : memref<1x8x32xf32, #tpu.memory_space<vmem>>, vector<1x8x32xf32>
    tpu.vector_store %arg12[%c0_25, %c0_26, %c0_27], %37 {strides = array<i32>} : memref<1x8x32xf32, #tpu.memory_space<vmem>>, vector<1x8x32xf32>,
    %c0_28 = arith.constant 0 : index
    %c0_29 = arith.constant 0 : index
    %39 = vector.load %arg10[%c0_28, %c0_29] : memref<1x8xf32, #tpu.memory_space<vmem>>, vector<1x8xf32>
    tpu.vector_store %arg10[%c0_28, %c0_29], %20 {strides = array<i32>} : memref<1x8xf32, #tpu.memory_space<vmem>>, vector<1x8xf32>,
    %c0_i32_30 = arith.constant 0 : i32
    %40 = arith.cmpi eq, %arg1, %c0_i32_30 : i32
    %41 = arith.extui %40 : i1 to i32
    %c0_i32_31 = arith.constant 0 : i32
    %42 = arith.cmpi ne, %41, %c0_i32_31 : i32
    scf.if %42 {
      %c0_32 = arith.constant 0 : index
      %c0_33 = arith.constant 0 : index
      %c0_34 = arith.constant 0 : index
      %43 = vector.load %arg12[%c0_32, %c0_33, %c0_34] : memref<1x8x32xf32, #tpu.memory_space<vmem>>, vector<1x8x32xf32>
      %c0_35 = arith.constant 0 : index
      %c0_36 = arith.constant 0 : index
      %44 = vector.load %arg11[%c0_35, %c0_36] : memref<1x8xf32, #tpu.memory_space<vmem>>, vector<1x8xf32>
      %45 = tpu.reciprocal %44 {approx = true} : vector<1x8xf32> -> vector<1x8xf32>
      %46 = vector.shape_cast %45 : vector<1x8xf32> to vector<1x8x1xf32>
      %47 = vector.broadcast %46 : vector<1x8x1xf32> to vector<1x8x32xf32>
      %48 = arith.mulf %43, %47 : vector<1x8x32xf32>
      %cst_37 = arith.constant dense<0.000000e+00> : vector<1x8xf32>
      %49 = vector.multi_reduction <add>, %48, %cst_37 [2] : vector<1x8x32xf32> to vector<1x8xf32>
      %50 = vector.shape_cast %49 : vector<1x8xf32> to vector<1x8x1xf32>
      %cst_38 = arith.constant 3.200000e+01 : f32
      %51 = vector.broadcast %cst_38 : f32 to vector<1x8x1xf32>
      %52 = arith.divf %50, %51 : vector<1x8x1xf32>
      %53 = vector.broadcast %52 : vector<1x8x1xf32> to vector<1x8x32xf32>
      %54 = arith.subf %48, %53 : vector<1x8x32xf32>
      %55 = arith.mulf %54, %54 : vector<1x8x32xf32>
      %cst_39 = arith.constant dense<0.000000e+00> : vector<1x8xf32>
      %56 = vector.multi_reduction <add>, %55, %cst_39 [2] : vector<1x8x32xf32> to vector<1x8xf32>
      %57 = vector.shape_cast %56 : vector<1x8xf32> to vector<1x8x1xf32>
      %cst_40 = arith.constant 3.200000e+01 : f32
      %58 = vector.broadcast %cst_40 : f32 to vector<1x8x1xf32>
      %59 = arith.divf %57, %58 : vector<1x8x1xf32>
      %cst_41 = arith.constant 9.99999974E-6 : f32
      %60 = vector.broadcast %cst_41 : f32 to vector<1x8x1xf32>
      %61 = arith.addf %59, %60 : vector<1x8x1xf32>
      %62 = math.rsqrt %61 : vector<1x8x1xf32>
      %63 = vector.broadcast %62 : vector<1x8x1xf32> to vector<1x8x32xf32>
      %64 = arith.mulf %54, %63 : vector<1x8x32xf32>
      %c0_42 = arith.constant 0 : index
      %c0_43 = arith.constant 0 : index
      %65 = vector.load %arg7[%c0_42, %c0_43] : memref<1x32xf32, #tpu.memory_space<vmem>>, vector<1x32xf32>
      %66 = vector.shape_cast %65 : vector<1x32xf32> to vector<1x1x32xf32>
      %67 = vector.broadcast %66 : vector<1x1x32xf32> to vector<1x8x32xf32>
      %68 = arith.mulf %64, %67 : vector<1x8x32xf32>
      %c0_44 = arith.constant 0 : index
      %c0_45 = arith.constant 0 : index
      %69 = vector.load %arg8[%c0_44, %c0_45] : memref<1x32xf32, #tpu.memory_space<vmem>>, vector<1x32xf32>
      %70 = vector.shape_cast %69 : vector<1x32xf32> to vector<1x1x32xf32>
      %71 = vector.broadcast %70 : vector<1x1x32xf32> to vector<1x8x32xf32>
      %72 = arith.addf %68, %71 : vector<1x8x32xf32>
      %c0_46 = arith.constant 0 : index
      %c0_47 = arith.constant 0 : index
      %c0_48 = arith.constant 0 : index
      %73 = vector.load %arg9[%c0_46, %c0_47, %c0_48] : memref<1x8x32xf32, #tpu.memory_space<vmem>>, vector<1x8x32xf32>
      tpu.vector_store %arg9[%c0_46, %c0_47, %c0_48], %72 {strides = array<i32>} : memref<1x8x32xf32, #tpu.memory_space<vmem>>, vector<1x8x32xf32>,
    } else {
    }
    return
  }
  func.func @transform_0(%arg0: i32, %arg1: i32) -> (i32, i32, i32) {
    %c0_i32 = arith.constant 0 : i32
    %c0_i32_0 = arith.constant 0 : i32
    return %arg0, %arg1, %c0_i32 : i32, i32, i32
  }
  func.func @transform_1(%arg0: i32, %arg1: i32) -> (i32, i32) {
    %c0_i32 = arith.constant 0 : i32
    %c0_i32_0 = arith.constant 0 : i32
    %c0_i32_1 = arith.constant 0 : i32
    return %c0_i32, %c0_i32_0 : i32, i32
  }
  func.func @transform_2(%arg0: i32, %arg1: i32) -> (i32, i32) {
    %c0_i32 = arith.constant 0 : i32
    %c0_i32_0 = arith.constant 0 : i32
    %c0_i32_1 = arith.constant 0 : i32
    return %c0_i32, %c0_i32_0 : i32, i32
  }
  func.func @transform_3(%arg0: i32, %arg1: i32) -> (i32, i32) {
    %c0_i32 = arith.constant 0 : i32
    %c0_i32_0 = arith.constant 0 : i32
    %c0_i32_1 = arith.constant 0 : i32
    return %c0_i32, %c0_i32_0 : i32, i32
  }
  func.func @transform_4(%arg0: i32, %arg1: i32) -> (i32, i32) {
    %c0_i32 = arith.constant 0 : i32
    %c0_i32_0 = arith.constant 0 : i32
    %c0_i32_1 = arith.constant 0 : i32
    return %c0_i32, %c0_i32_0 : i32, i32
  }
  func.func @transform_5(%arg0: i32, %arg1: i32) -> (i32, i32) {
    %c0_i32 = arith.constant 0 : i32
    %c0_i32_0 = arith.constant 0 : i32
    %c0_i32_1 = arith.constant 0 : i32
    return %c0_i32, %c0_i32_0 : i32, i32
  }
  func.func @transform_6(%arg0: i32, %arg1: i32) -> (i32, i32) {
    %c0_i32 = arith.constant 0 : i32
    %c0_i32_0 = arith.constant 0 : i32
    %c0_i32_1 = arith.constant 0 : i32
    return %c0_i32, %c0_i32_0 : i32, i32
  }
  func.func @transform_7(%arg0: i32, %arg1: i32) -> (i32, i32, i32) {
    %c0_i32 = arith.constant 0 : i32
    %c0_i32_0 = arith.constant 0 : i32
    %c0_i32_1 = arith.constant 0 : i32
    return %arg0, %c0_i32, %c0_i32_0 : i32, i32, i32
  }
}

</mosaic_0001>

<bundles_post_ra>
// kernel: tpu_custom_call.1
= control target key start
LH: loop header
LB: loop body
LE: loop exit
PB: predicated region body
PF: predicated region fallthrough
CT: control target
= control target key end

     0   :  { %s1923_s0 = inlined_call_operand.hbm [shape: f32[2,8,32], index: 0, kind: input, shape index: {}]   ;;  %s1924_s1 = inlined_call_operand.hbm [shape: f32[8,32], index: 1, kind: input, shape index: {}]   ;;  %s1925_s2 = inlined_call_operand.hbm [shape: f32[32,32], index: 2, kind: input, shape index: {}]   ;;  %s1926_s3 = inlined_call_operand.hbm [shape: f32[32,32], index: 3, kind: input, shape index: {}]   ;;  %s1927_s4 = inlined_call_operand.vmem [shape: f32[1,32], index: 4, kind: input, shape index: {}]   ;;  %s1928_s5 = inlined_call_operand.vmem [shape: f32[1,32], index: 5, kind: input, shape index: {}]   ;;  %s1929_s6 = inlined_call_operand.vmem [shape: f32[1,32], index: 6, kind: input, shape index: {}]   ;;  %s1930_s7 = inlined_call_operand.hbm [shape: f32[2,8,32], index: 7, kind: output, shape index: {}]  }
   0x1   :  { %1937 = sst [smem:[#allocation20_spill]] %s1924_s1 }
   0x2   :  { %12 = vsyncpa [#allocation6], 0 }
   0x3   :  { %14 = vsyncpa [#allocation6 + $0x1], 0 }
   0x4   :  { %15 = vsyncpa [#allocation9], 0 }
   0x5   :  { %16 = vsyncpa [#allocation12], 0 }
   0x6   :  { %17 = vsyncpa [#allocation7], 0 }
   0x7   :  { %19 = vsyncpa [#allocation7 + $0x1], 0  ;;  %s1541_s24 = smov 0   ;;  %s1543_s25 = smov 0  }
   0x8   :  { %s1545_s26 = smov 0   ;;  %s1547_s27 = smov 0  }
   0x9   :  { %s1549_s28 = smov 0   ;;  %s1551_s29 = smov 0  }
   0xa LB: > { %1938 = sst [smem:[#allocation18_spill]] %s1466_s24  ;;  %s1086_s30 = sadd.s32 4294967295, %s1486_s29   ;;  %s1486_s29 = sphi %s1551_s29, %s25_s29   ;;  %s1482_s28 = sphi %s1549_s28, %s1963_s28   ;;  %s1478_s27 = sphi %s1547_s27, %s1962_s27   ;;  %s1474_s26 = sphi %s1545_s26, %s1961_s26   ;;  %s1470_s25 = sphi %s1543_s25, %s1960_s25   ;;  %s1466_s24 = sphi %s1541_s24, %s1959_s24  }
   0xb   : > { %s1087_s8 = sadd.s32 4294967294, %s1486_s29   ;;  %p59_p0 = scmp.ne.s32.totalorder %s1470_s25, %s1466_s24 }
   0xc   : > { %p1575_p1 = scmp.eq.s32.totalorder %s1086_s30, 0  ;;  %p1579_p2 = scmp.eq.s32.totalorder %s1086_s30, 1 }
   0xd   : > { %p215_p3 = scmp.eq.s32.totalorder %s1087_s8, 1  ;;  %p1088_p5 = scmp.ge.s32.totalorder %s1486_s29, 1 }
   0xe   : > { %s1939_s9 = scalar_select %p1575_p1, 1, 0 }
   0xf   : > { %s1940_s10 = scalar_select %p1579_p2, 1, 0 }
  0x10   : > { %p1585_p4 = por %p1575_p1, %p59_p0  ;;  %p1590_p6 = por %p215_p3, %p59_p0 }
  0x11   : > { %p222_p7 = scmp.lt.s32.totalorder %s1486_s29, 3  ;;  %s1488_s14 = smov [#allocation8]  }
  0x12   : > { %s1941_s11 = scalar_select %p1585_p4, 1, 0 }
  0x13   : > { %s1942_s12 = scalar_select %p1590_p6, 1, 0 }
  0x14   : > { %p1595_p8 = pnand %p1088_p5, %p222_p7  ;;  %s235_s15 = sshll.u32 %s1488_s14, 4  ;;  %s236_s15 = int_to_ptr.vmem [resolvable:$true] %s235_s15 }
  0x15   : > { %1943 = sst [smem:[#allocation19_spill]] %s1942_s12  ;;  %s1489_s16 = smov [#allocation10]  }
  0x16   : > { %s1944_s13 = scalar_select %p1595_p8, 1, 0 }
  0x17   : > { %p1187_p10 = pneg %p1595_p8  ;;  %s245_s17 = sshll.u32 %s1489_s16, 4  ;;  %s1608_s17 = int_to_ptr.vmem [resolvable:$true] %s245_s17 }
  0x18   : > { %s1490_s19 = smov [#allocation11]   ;;  %s1946_s1 = sld [smem:[#allocation20_spill]] }
  0x19   : > { %p1604_p11 = pnand %p1187_p10, %p1575_p1  ;;  %s1610_s20 = sshll.u32 %s1490_s19, 4  ;;  %s259_s20 = int_to_ptr.vmem [resolvable:$true] %s1610_s20 }
  0x1b   : > { %p1620_p13 = pneg %p1604_p11 }
  0x1e   : > { %s1282_s23 = scalar_lea.hbm %s1946_s1, 128 }
  0x1f   : > { %p1283_p12 = scmp.ne.s32.totalorder %s1946_s1, %s1282_s23  ;;  %p1289_p5 = scmp.lt.u32.totalorder %s1282_s23, %s1946_s1 }
  0x21   : > { %p1285_p0 = pnand %p1620_p13, %p1283_p12 }
  0x23   : > { %p1286_p3 = pneg %p1285_p0 }
  0x25   : > { %p1291_p7 = pnand %p1289_p5, %p1286_p3 }
  0x27   : > { %1294 = shalt.err (!%p1291_p7)
}
  0x28   : > { %s1295_s21 = scalar_lea.vmem %s236_s15, 128  ;;  %p1303_p1 = scmp.lt.s32.totalorder %s236_s15, %s236_s15 }
  0x29   : > { %p1296_p10 = scmp.ne.s32.totalorder %s236_s15, %s1295_s21  ;;  %p1304_p4 = scmp.lt.s32.totalorder %s1295_s21, %s1295_s21 }
  0x2b   : > { %p1298_p9 = pnand %p1296_p10, %p1620_p13  ;;  %p1305_p8 = por %p1304_p4, %p1303_p1 }
  0x2d   : > { %p1299_p6 = pneg %p1298_p9 }
  0x2f   : > { %p1306_p2 = pnand %p1305_p8, %p1299_p6 }
  0x31   : > { %1309 = shalt.err (!%p1306_p2)
}
  0x32   : > { %1190 = dma.hbm_to_vmem [thread:$0]  (!%p1604_p11), %s1946_s1, 128, %s236_s15, [#allocation9]  }
  0x33   : > { %s1310_s16 = scalar_lea.hbm %s1925_s2, 512 }
  0x34   : > { %p1311_p9 = scmp.ne.s32.totalorder %s1925_s2, %s1310_s16  ;;  %p1317_p2 = scmp.lt.u32.totalorder %s1310_s16, %s1925_s2 }
  0x36   : > { %p1313_p12 = pnand %p1311_p9, %p1620_p13 }
  0x38   : > { %p1314_p1 = pneg %p1313_p12 }
  0x3a   : > { %p1319_p4 = pnand %p1317_p2, %p1314_p1 }
  0x3c   : > { %1322 = shalt.err (!%p1319_p4)
}
  0x3d   : > { %s1323_s15 = scalar_lea.vmem %s1608_s17, 512  ;;  %p1331_p3 = scmp.lt.s32.totalorder %s1608_s17, %s1608_s17 }
  0x3e   : > { %p1324_p6 = scmp.ne.s32.totalorder %s1608_s17, %s1323_s15  ;;  %p1332_p5 = scmp.lt.s32.totalorder %s1323_s15, %s1323_s15 }
  0x40   : > { %p1326_p8 = pnand %p1324_p6, %p1620_p13  ;;  %p1333_p7 = por %p1332_p5, %p1331_p3 }
  0x42   : > { %p1327_p0 = pneg %p1326_p8 }
  0x44   : > { %p1334_p10 = pnand %p1333_p7, %p1327_p0 }
  0x46   : > { %1337 = shalt.err (!%p1334_p10)
}
  0x47   : > { %s1491_s12 = smov 128   ;;  %s1492_s24 = smov 8  }
  0x48   : > { %1193 = dma.hbm_to_vmem [thread:$0]  (!%p1604_p11), %s1925_s2, 512, %s1608_s17, [#allocation9], %s1491_s12, %s1491_s12, %s1492_s24  }
  0x49   : > { %s1338_s16 = scalar_lea.hbm %s1926_s3, 512 }
  0x4a   : > { %p1339_p9 = scmp.ne.s32.totalorder %s1926_s3, %s1338_s16  ;;  %p1345_p2 = scmp.lt.u32.totalorder %s1338_s16, %s1926_s3 }
  0x4c   : > { %p1341_p12 = pnand %p1339_p9, %p1620_p13 }
  0x4e   : > { %p1342_p1 = pneg %p1341_p12 }
  0x50   : > { %p1347_p4 = pnand %p1345_p2, %p1342_p1 }
  0x52   : > { %1350 = shalt.err (!%p1347_p4)
}
  0x53   : > { %s1351_s22 = scalar_lea.vmem %s259_s20, 512  ;;  %p1359_p3 = scmp.lt.s32.totalorder %s259_s20, %s259_s20 }
  0x54   : > { %p1352_p6 = scmp.ne.s32.totalorder %s259_s20, %s1351_s22  ;;  %p1360_p5 = scmp.lt.s32.totalorder %s1351_s22, %s1351_s22 }
  0x56   : > { %p1354_p8 = pnand %p1352_p6, %p1620_p13  ;;  %p1361_p7 = por %p1360_p5, %p1359_p3 }
  0x58   : > { %p1355_p0 = pneg %p1354_p8 }
  0x5a   : > { %p1362_p10 = pnand %p1361_p7, %p1355_p0 }
  0x5c   : > { %1365 = shalt.err (!%p1362_p10)
}
  0x5d   : > { %1196 = dma.hbm_to_vmem [thread:$0]  (!%p1604_p11), %s1926_s3, 512, %s259_s20, [#allocation12], %s1491_s12, %s1491_s12, %s1492_s24  }
  0x5e   : > { %s46_s1 = sadd.s32 1, %s1474_s26  ;;  %s37_s14 = sadd.s32 1, %s1482_s28 }
  0x5f   : > { %p53_p13 = scmp.ne.s32.totalorder %s1474_s26, %s1470_s25  ;;  %p39_p9 = scmp.ge.s32.totalorder %s37_s14, 2 }
  0x60   : > { %p54_p12 = scmp.eq.s32.totalorder %s1486_s29, 0  ;;  %p1948_p1 = scmp.ne.s32.totalorder %s1940_s10, 0 }
  0x61   : > { %p1208_p4 = scmp.lt.s32.totalorder %s1486_s29, 2  ;;  %s1965_s14 = smov (%p39_p9, %s37_s14), 0 }
  0x62   : > { %p1685_p2 = por %p1948_p1, %p53_p13  ;;  %p55_p6 = por %p54_p12, %p53_p13 }
  0x63   : > { %s281_s23 = sand.u32 1, %s1474_s26   ;;  %s41_s8 = ssub.s32 %s1482_s28, %s1965_s14 }
  0x64   : > { %p44_p8 = scmp.eq.s32.totalorder %s41_s8, 0  ;;  %s1093_s20 = sshll.u32 %s281_s23, 3 }
  0x65   : > { %s1094_s12 = sshll.u32 %s1482_s28, 7  ;;  %s285_s21 = scalar_lea.vmem [#allocation5], %s1093_s20 }
  0x66   : > { %s1697_s24 = scalar_select %p44_p8, %s1474_s26, %s46_s1  }
  0x67   : > { %s1702_s10 = scalar_lea.hbm %s1923_s0, %s1094_s12  ;;  %s293_s15 = sshll.u32 %s285_s21, 4  ;;  %s1704_s15 = int_to_ptr.vmem [resolvable:$true] %s293_s15 }
  0x68   : > { %p1708_p11 = pnand %p1208_p4, %p55_p6  ;;  %s282_s17 = scalar_lea.sflag [#allocation6], %s281_s23 }
  0x69   : > { %s1366_s30 = scalar_lea.hbm %s1702_s10, 128  ;;  %s1371_s20 = scalar_lea.hbm %s1923_s0, 256 }
  0x6a   : > { %p1367_p0 = scmp.ne.s32.totalorder %s1702_s10, %s1366_s30  ;;  %p1368_p3 = pneg %p1708_p11 }
  0x6b   : > { %p1372_p10 = scmp.lt.u32.totalorder %s1702_s10, %s1923_s0  ;;  %p1373_p13 = scmp.lt.u32.totalorder %s1371_s20, %s1366_s30 }
  0x6c   : > { %p1369_p5 = pnand %p1368_p3, %p1367_p0  ;;  %p1375_p12 = scmp.lt.u32.totalorder %s1366_s30, %s1702_s10 }
  0x6d   : > { %p1374_p9 = por %p1373_p13, %p1372_p10 }
  0x6e   : > { %p1370_p7 = pneg %p1369_p5 }
  0x6f   : > { %p1376_p1 = por %p1375_p12, %p1374_p9 }
  0x71   : > { %p1377_p4 = pnand %p1376_p1, %p1370_p7 }
  0x73   : > { %1380 = shalt.err (!%p1377_p4)
}
  0x74   : > { %s1381_s23 = scalar_lea.vmem %s1704_s15, 128  ;;  %s1493_s19 = smov [#allocation5]  }
  0x75   : > { %p1382_p6 = scmp.ne.s32.totalorder %s1704_s15, %s1381_s23  ;;  %s1386_s21 = sshll.u32 %s1493_s19, 4  ;;  %s1387_s21 = int_to_ptr.vmem [resolvable:$false] %s1386_s21 }
  0x76   : > { %s1388_s1 = scalar_lea.vmem %s1387_s21, 256  ;;  %p1389_p5 = scmp.lt.s32.totalorder %s1704_s15, %s1387_s21 }
  0x77   : > { %p1384_p8 = pnand %p1382_p6, %p1368_p3  ;;  %p1390_p10 = scmp.lt.s32.totalorder %s1388_s1, %s1381_s23 }
  0x79   : > { %p1385_p0 = pneg %p1384_p8  ;;  %p1391_p13 = por %p1390_p10, %p1389_p5 }
  0x7b   : > { %p1392_p9 = pnand %p1391_p13, %p1385_p0 }
  0x7d   : > { %1395 = shalt.err (!%p1392_p9)
}
  0x7e   : > { %1200 = dma.hbm_to_vmem [thread:$0]  (!%p1708_p11), %s1702_s10, 128, %s1704_s15, %s282_s17  }
  0x7f   : > { %p1951_p7 = scmp.ne.s32.totalorder %s1944_s13, 0 }
  0x80   : > { %s1740_s30 = sand.u32 (!%p1951_p7), 1, %s1470_s25   ;;  %p1952_p3 = scmp.ne.s32.totalorder (!%p1951_p7), %s1941_s11, 0 }
  0x81   : > { %302 = sbr.rel (%p1951_p7) target bundleno = 1761 (0x6e1), region = 48  ;;  %s1096_s8 = sshll.u32 (!%p1951_p7), %s1740_s30, 3 }
  0x82   : > { %s305_s20 = scalar_lea.sflag (!%p1951_p7), [#allocation6], %s1740_s30  ;;  %s308_s12 = scalar_lea.vmem (!%p1951_p7), [#allocation5], %s1096_s8 }
  0x88   : > { %1449 = dma.done.wait (%p1952_p3), %s305_s20, 128  }
  0x89   : > { %1451 = vsyncadd (%p1952_p3), %s305_s20, 4294967168  ;;  %p1953_p11 = scmp.ne.s32.totalorder %s1939_s9, 0 }
  0x8b   : > { %1453 = dma.done.wait (%p1953_p11), [#allocation9], 640  }
  0x8c   : > { %1455 = vsyncadd (%p1953_p11), [#allocation9], 4294966656 }
  0x8d   : > { %1457 = dma.done.wait (%p1953_p11), [#allocation12], 512  }
  0x8e   : > { %1459 = vsyncadd (%p1953_p11), [#allocation12], 4294966784  ;;  %vm358_vm0 = vcmask 261120   ;;  %v1494_v0 = vmov 0.0|0.0   ;;  %vm1495_vm1 = vmmov 0   ;;  %v1496_v1 = vmov 0.0  }
  0x8f   : > { %1159 = vmatprep.subr.bf16.mxu0 %v1494_v0  ;;  %1135 = vmatprep.mubr.msk.f32.mxu0 %vm1495_vm1, %v1496_v1  ;;  %359 = vst.msk [vmem:[#allocation4] sm:$0xff] %vm358_vm0, %v1496_v1  ;;  %v362_v2 = vld [vmem:[#allocation10] sm:$0xff]  ;;  %v363_v3 = vld [vmem:[#allocation10 + $0x8] sm:$0xff]  ;;  %v364_v4 = vld [vmem:[#allocation10 + $0x10] sm:$0xff]  ;;  %vm598_vm2 = vcmask 64512   ;;  %v1497_v15 = vmov 0   ;;  %v603_v16 = vlaneseq }
  0x90   : > { %1165 = vmatprep.subr.bf16.mxu1 %v1494_v0  ;;  %1146 = vmatprep.mubr.msk.f32.mxu1 %vm1495_vm1, %v1496_v1  ;;  %v1160_v5 = vpack.c.bf16 %v363_v3, %v362_v2  ;;  %v365_v6 = vld [vmem:[#allocation10 + $0x18] sm:$0xff]  ;;  %v360_v8 = vld [vmem:[%s308_s12] sm:$0xff]  ;;  %v366_v18 = vld [vmem:[#allocation11] sm:$0xff]  ;;  %v1498_v26 = vmov 1966171168   ;;  %vm355_vm3 = vcmask 57344  }
  0x91   : > { %v1163_v7 = vpack.c.bf16 %v365_v6, %v364_v4  ;;  %v361_v11 = vld [vmem:[#allocation8] sm:$0xff]  ;;  %1272 = vset.pattern.permute.xlu0 %v1497_v15  ;;  %1273 = vset.pattern.permute.xlu1 %v1497_v15  ;;  %v1774_v17 = vshrl.u32 %v603_v16, 7  ;;  %v367_v19 = vld [vmem:[#allocation11 + $0x8] sm:$0xff]  ;;  %v368_v20 = vld [vmem:[#allocation11 + $0x10] sm:$0xff]  ;;  %v688_v21 = vand.u32 127, %v603_v16  ;;  %v640_v27 = vunpack.c.l.s4 %v1498_v26  ;;  %s1110_s17 = sshll.u32 %s1478_s27, 7 }
  0x92   : > { %1161 = vmatpush3.bf16.msra.mxu0 %v1160_v5  ;;  %v1166_v22 = vpack.c.bf16 %v367_v19, %v366_v18  ;;  %v369_v23 = vld [vmem:[#allocation11 + $0x18] sm:$0xff]  ;;  %v1499_v60 = vmov -inf   ;;  %357 = vst.msk [vmem:[#allocation3] sm:$0x1] %vm355_vm3, %v1496_v1  ;;  %s350_s16 = scalar_lea.vmem [#allocation13], %s1096_s8  ;;  %s1873_s1 = scalar_lea.hbm %s1930_s7, %s1110_s17 }
  0x93   : > { %1162 = vmatprep.subr.bf16.mxu0 %v1494_v0  ;;  %v1777_v24 = vsub.s32 %v688_v21, %v1774_v17  ;;  %v1169_v25 = vpack.c.bf16 %v369_v23, %v368_v20  ;;  %v641_v28 = vunpack.c.0.s8 %v640_v27  ;;  %v1784_v29 = vsub.s32 0, %v1774_v17  ;;  %356 = vst.msk [vmem:[#allocation2] sm:$0x1] %vm355_vm3, %v1499_v60  ;;  %v1102_v63 = vld [vmem:[%s1927_s4] ss:$0 sm:$0xff]  ;;  %s978_s23 = sshll.u32 %s350_s16, 4  ;;  %s1875_s23 = int_to_ptr.vmem [resolvable:$true] %s978_s23 }
  0x94   : > { %1167 = vmatpush3.bf16.msra.mxu1 %v1166_v22  ;;  %v609_v30 = vsub.s32 1, %v1774_v17  ;;  %v613_v31 = vsub.s32 2, %v1774_v17  ;;  %v617_v32 = vsub.s32 3, %v1774_v17  ;;  %v621_v33 = vsub.s32 4, %v1774_v17  ;;  %s965_s20 = scalar_lea.sflag [#allocation7], %s1740_s30  ;;  %s1396_s12 = scalar_lea.vmem %s1875_s23, 128 }
  0x95   : > { %1168 = vmatprep.subr.bf16.mxu1 %v1494_v0  ;;  %v625_v34 = vsub.s32 5, %v1774_v17  ;;  %v629_v35 = vsub.s32 6, %v1774_v17  ;;  %v633_v36 = vsub.s32 7, %v1774_v17  ;;  %v1794_v38 = vsub.s32 %v641_v28, %v1774_v17  ;;  %p1397_p12 = scmp.ne.s32.totalorder %s1875_s23, %s1396_s12  ;;  %s1500_s27 = smov [#allocation13]  }
  0x96   : > { %1164 = vmatpush3.bf16.msra.mxu0 %v1163_v7  ;;  %s1400_s8 = sshll.u32 %s1500_s27, 4  ;;  %s1401_s8 = int_to_ptr.vmem [resolvable:$false] %s1400_s8 }
  0x97   : > { %1149 = vmatprep.subr.mxu0 %v1496_v1  ;;  %p1398_p1 = pnand %p1397_p12, %p1685_p2  ;;  %s1402_s9 = scalar_lea.vmem %s1401_s8, 256 }
  0x98   : > { %1170 = vmatpush3.bf16.msra.mxu1 %v1169_v25  ;;  %p1403_p6 = scmp.lt.s32.totalorder %s1875_s23, %s1401_s8  ;;  %p1404_p8 = scmp.lt.s32.totalorder %s1402_s9, %s1396_s12 }
  0x99   : > { %1136 = vmatmul.mubr.msk.f32.vlgmr.msra.gmra.mrb[0].mxu0 %vm358_vm0, %v360_v8  ;;  %1154 = vmatprep.subr.mxu1 %v1496_v1  ;;  %p1399_p4 = pneg %p1398_p1 }
  0x9a   : > { %1151 = vmatprep.mubr.msk.f32.mxu0 %vm1495_vm1, %v1496_v1  ;;  %v597_v5 = vld [vmem:[#allocation2] sm:$0x1]  ;;  %p1405_p0 = por %p1404_p8, %p1403_p6 }
  0x9b   : > { %1147 = vmatmul.mubr.msk.f32.vlgmr.msra.gmra.mrb[0].mxu1 %vm358_vm0, %v360_v8 }
  0x9c   : > { %1156 = vmatprep.mubr.msk.f32.mxu1 %vm1495_vm1, %v1496_v1  ;;  %p1406_p5 = pnand %p1405_p0, %p1399_p4 }
 0x16c   : > { %v440_v9 = vpop.f32.mrb[0].mxu0 }
 0x16d   : > { %v1137_v10 = vpop.f32.mrb[1].mxu0  ;;  %1150 = vmatpush3.xpose.msk.msra.mxu0 %vm358_vm0, %v440_v9 }
 0x16e   : > { %v517_v0 = vpop.f32.mrb[0].mxu1 }
 0x16f   : > { %v518_v3 = vadd.f32 %v1102_v63, %v517_v0  ;;  %v1148_v4 = vpop.f32.mrb[1].mxu1 }
 0x170   : > { %1152 = vmatmul.mubr.msk.f32.vlgmr.msra.gmra.mrb[2].mxu0 %vm358_vm0, %v361_v11 }
 0x171   : > { %1155 = vmatpush3.msra.mxu1 %v518_v3 }
 0x243   : > { %v1770_v12 = vpop.f32.mrb[2].mxu0 }
 0x244   : > { %v1153_v13 = vpop.f32.mrb[3].mxu0  ;;  %v599_v14 = vsel %vm598_vm2, %v1770_v12, -inf }
 0x245   : > { %600 = vmax.xlane.f32.xlu0 %v599_v14 }
 0x2d2   : > { %v601_v37 = vpop.xlane.xlu0 %600 }
 0x2d3   : > { %v606_v39 = vrot.slane %v601_v37, %v1784_v29  ;;  %v610_v40 = vrot.slane %v601_v37, %v609_v30  ;;  %v614_v41 = vrot.slane %v601_v37, %v613_v31  ;;  %v618_v42 = vrot.slane %v601_v37, %v617_v32 }
 0x2d4   : > { %v622_v43 = vrot.slane %v601_v37, %v621_v33  ;;  %v626_v44 = vrot.slane %v601_v37, %v625_v34  ;;  %v630_v45 = vrot.slane %v601_v37, %v629_v35  ;;  %v634_v46 = vrot.slane %v601_v37, %v633_v36 }
 0x2d5   : > { %v635_v47 = vcombine.low %v606_v39, %v610_v40  ;;  %v636_v48 = vcombine.low %v614_v41, %v618_v42 }
 0x2d6   : > { %v637_v49 = vcombine.low %v622_v43, %v626_v44  ;;  %v638_v50 = vcombine.low %v630_v45, %v634_v46 }
 0x2d7   : > { %v645_v51 = vrot.slane %v635_v47, %v1794_v38  ;;  %v652_v52 = vrot.slane %v636_v48, %v1794_v38 }
 0x2d8   : > { %v659_v53 = vrot.slane %v637_v49, %v1794_v38  ;;  %v666_v54 = vrot.slane %v638_v50, %v1794_v38  ;;  %v722_v50 = vld [vmem:[#allocation3] sm:$0x1] }
 0x2d9   : > { %v667_v55 = vcombine.low %v645_v51, %v652_v52 }
 0x2da   : > { %v668_v56 = vcombine.low %v659_v53, %v666_v54 }
 0x2db   : > { %v675_v57 = vrot.slane %v667_v55, %v1794_v38 }
 0x2dc   : > { %v682_v58 = vrot.slane %v668_v56, %v1794_v38 }
 0x2de   : > { %v683_v59 = vcombine.low %v675_v57, %v682_v58 }
 0x2e0   : > { %685 = vperm.xlu0 %1272, %v683_v59  }
 0x35f   : > { %v686_v61 = vpop.permute.xlu0 %685 }
 0x360   : > { %v692_v62 = vrot.slane %v686_v61, %v1777_v24 }
 0x362   : > { %v699_v2 = vrot.slane %v692_v62, %v1794_v38 }
 0x364   : > { %v706_v6 = vrot.slane %v699_v2, %v1794_v38 }
 0x366   : > { %v708_v7 = vmax.f32 %v597_v5, %v706_v6 }
 0x368   : > { %v715_v1 = vrot.slane %v708_v7, %v1784_v29  ;;  %918 = vst.msk [vmem:[#allocation2] sm:$0x1] %vm355_vm3, %v708_v7  ;;  %v709_v8 = vsub.f32 %v597_v5, %v708_v7  ;;  %v1107_v5 = vld [vmem:[%s1928_s5] ss:$0 sm:$0xff] }
 0x369   : > { %v1108_v7 = vld [vmem:[%s1929_s6] ss:$0 sm:$0xff] }
 0x36a   : > { %717 = vbcast.lane.b32.xlu1 %v715_v1, 256  ;;  %v710_v9 = vmul.f32 1.442695, %v709_v8 }
 0x36c   : > { %1274 = vpow2.f32 %v710_v9 }
 0x376   : > { %v1275_v10 = vpop.eup %1274 }
 0x377   : > { %v910_v11 = vrot.slane %v1275_v10, %v1784_v29  ;;  %v723_v52 = vmul.f32 %v1275_v10, %v722_v50 }
 0x379   : > { %912 = vbcast.lane.b32.xlu0 %v910_v11, 256 }
 0x3dc   : > { %v718_v13 = vpop.permute.xlu1 %717 }
 0x3dd   : > { %v719_v14 = vsub.f32 %v1770_v12, %v718_v13 }
 0x3df   : > { %v720_v15 = vmul.f32 1.442695, %v719_v14 }
 0x3e1   : > { %1276 = vpow2.f32 %v720_v15 }
 0x3eb   : > { %v1277_v16 = vpop.eup %1276  ;;  %v913_v43 = vpop.permute.xlu0 %912 }
 0x3ec   : > { %1157 = vmatmul.mubr.msk.f32.vlgmr.msra.gmra.mrb[2].mxu1 %vm598_vm2, %v1277_v16  ;;  %v724_v18 = vsel %vm598_vm2, %v1277_v16, 0.0 }
 0x3ed   : > { %725 = vadd.xlane.f32.xlu1 %v724_v18 }
 0x47a   : > { %v726_v19 = vpop.xlane.xlu1 %725 }
 0x47b   : > { %v731_v20 = vrot.slane %v726_v19, %v1784_v29  ;;  %v735_v21 = vrot.slane %v726_v19, %v609_v30  ;;  %v739_v22 = vrot.slane %v726_v19, %v613_v31  ;;  %v743_v12 = vrot.slane %v726_v19, %v617_v32 }
 0x47c   : > { %v747_v23 = vrot.slane %v726_v19, %v621_v33  ;;  %v751_v25 = vrot.slane %v726_v19, %v625_v34  ;;  %v755_v26 = vrot.slane %v726_v19, %v629_v35  ;;  %v759_v27 = vrot.slane %v726_v19, %v633_v36  ;;  %v914_v36 = vld [vmem:[#allocation4] sm:$0xff] }
 0x47d   : > { %v760_v28 = vcombine.low %v731_v20, %v735_v21  ;;  %v761_v30 = vcombine.low %v739_v22, %v743_v12  ;;  %v915_v44 = vmul.f32 %v914_v36, %v913_v43 }
 0x47e   : > { %v762_v37 = vcombine.low %v747_v23, %v751_v25  ;;  %v763_v39 = vcombine.low %v755_v26, %v759_v27 }
 0x47f   : > { %v770_v31 = vrot.slane %v760_v28, %v1794_v38  ;;  %v777_v32 = vrot.slane %v761_v30, %v1794_v38 }
 0x480   : > { %v784_v40 = vrot.slane %v762_v37, %v1794_v38  ;;  %v791_v33 = vrot.slane %v763_v39, %v1794_v38 }
 0x481   : > { %v792_v41 = vcombine.low %v770_v31, %v777_v32 }
 0x482   : > { %v793_v34 = vcombine.low %v784_v40, %v791_v33 }
 0x483   : > { %v800_v42 = vrot.slane %v792_v41, %v1794_v38 }
 0x484   : > { %v807_v35 = vrot.slane %v793_v34, %v1794_v38 }
 0x486   : > { %v808_v17 = vcombine.low %v800_v42, %v807_v35 }
 0x488   : > { %810 = vperm.xlu1 %1273, %v808_v17  }
 0x4bf   : > { %v903_v45 = vpop.f32.mrb[2].mxu1 }
 0x4c0   : > { %v916_v46 = vadd.f32 %v915_v44, %v903_v45  ;;  %v1158_v47 = vpop.f32.mrb[3].mxu1 }
 0x4c2   : > { %917 = vst.msk [vmem:[#allocation4] sm:$0xff] %vm358_vm0, %v916_v46 }
 0x4c9   : > { %v922_v58 = vld [vmem:[#allocation4] sm:$0xff] }
 0x507   : > { %v811_v48 = vpop.permute.xlu1 %810 }
 0x508   : > { %v815_v49 = vrot.slane %v811_v48, %v1777_v24 }
 0x50a   : > { %v822_v51 = vrot.slane %v815_v49, %v1794_v38 }
 0x50c   : > { %v829_v53 = vrot.slane %v822_v51, %v1794_v38 }
 0x50e   : > { %v831_v54 = vadd.f32 %v829_v53, %v723_v52 }
 0x510   : > { %833 = vst.msk [vmem:[#allocation3] sm:$0x1] %vm355_vm3, %v831_v54 }
 0x517   : > { %v923_v55 = vld [vmem:[#allocation3] sm:$0x1] }
 0x518   : > { %1278 = vrcp.f32 %v923_v55 }
 0x522   : > { %v1279_v56 = vpop.eup %1278 }
 0x523   : > { %v928_v57 = vrot.slane %v1279_v56, %v1784_v29 }
 0x525   : > { %930 = vbcast.lane.b32.xlu0 %v928_v57, 256 }
 0x597   : > { %v931_v59 = vpop.permute.xlu0 %930 }
 0x598   : > { %v932_v60 = vmul.f32 %v931_v59, %v922_v58 }
 0x59a   : > { %v933_v24 = vsel %vm358_vm0, %v932_v60, 0.0 }
 0x59b   : > { %934 = vadd.xlane.f32.xlu0 %v933_v24 }
 0x628   : > { %v935_v61 = vpop.xlane.xlu0 %934 }
 0x629   : > { %v937_v62 = vmul.f32 0.03125, %v935_v61 }
 0x62b   : > { %v938_v38 = vsub.f32 %v932_v60, %v937_v62 }
 0x62d   : > { %v939_v63 = vmul.f32 %v938_v38, %v938_v38 }
 0x62f   : > { %v940_v0 = vsel %vm358_vm0, %v939_v63, 0.0 }
 0x630   : > { %941 = vadd.xlane.f32.xlu1 %v940_v0 }
 0x6bd   : > { %v942_v2 = vpop.xlane.xlu1 %941 }
 0x6be   : > { %v943_v3 = vmul.f32 0.03125, %v942_v2 }
 0x6c0   : > { %v944_v29 = vadd.f32 1e-05, %v943_v3 }
 0x6c2   : > { %1280 = vrsqrt.f32 %v944_v29 }
 0x6cc   : > { %v1281_v4 = vpop.eup %1280 }
 0x6cd   : > { %v946_v6 = vmul.f32 %v1281_v4, %v938_v38 }
 0x6cf   : > { %v954_v1 = vmul.f32 %v1107_v5, %v946_v6 }
 0x6d1   : > { %v962_v8 = vadd.f32 %v1108_v7, %v954_v1 }
 0x6d3   : > { %963 = vst.msk [vmem:[%s350_s16] sm:$0xff] %vm358_vm0, %v962_v8 }
 0x6d4   : > { %1409 = shalt.err (!%p1406_p5)
}
 0x6d5   : > { %s1410_s30 = scalar_lea.hbm %s1873_s1, 128  ;;  %s1414_s10 = scalar_lea.hbm %s1930_s7, 256 }
 0x6d6   : > { %p1411_p10 = scmp.ne.s32.totalorder %s1873_s1, %s1410_s30  ;;  %p1415_p7 = scmp.lt.u32.totalorder %s1873_s1, %s1930_s7 }
 0x6d7   : > { %p1416_p3 = scmp.lt.u32.totalorder %s1414_s10, %s1410_s30  ;;  %p1418_p12 = scmp.lt.u32.totalorder %s1410_s30, %s1873_s1 }
 0x6d8   : > { %p1412_p13 = pnand %p1411_p10, %p1685_p2 }
 0x6d9   : > { %p1417_p11 = por %p1416_p3, %p1415_p7 }
 0x6da   : > { %p1413_p9 = pneg %p1412_p13 }
 0x6db   : > { %p1419_p1 = por %p1418_p12, %p1417_p11 }
 0x6dd   : > { %p1420_p4 = pnand %p1419_p1, %p1413_p9 }
 0x6df   : > { %1423 = shalt.err (!%p1420_p4)
}
 0x6e0   : > { %1185 = dma.vmem_to_hbm [thread:$0]  (%p1685_p2), %s1875_s23, 128, %s1873_s1, %s965_s20  }
 0x6e1 PF: > { %s1954_s17 = sld [smem:[#allocation18_spill]]  ;;  %s1955_s16 = sld [smem:[#allocation19_spill]] }
 0x6e2   : > { %p1957_p8 = scmp.ge.s32.totalorder %s1486_s29, 2 }
 0x6e7   : > { %s990_s19 = sand.u32 1, %s1954_s17   ;;  %p1956_p6 = scmp.ne.s32.totalorder %s1955_s16, 0 }
 0x6e8   : > { %s991_s21 = scalar_lea.sflag [#allocation7], %s990_s19 }
 0x6e9   : > { %p1202_p0 = pnand %p1957_p8, %p1956_p6 }
 0x6eb   : > { %1461 = dma.done.wait (!%p1202_p0), %s991_s21, 128  }
 0x6ec   : > { %1463 = vsyncadd (!%p1202_p0), %s991_s21, 4294967168  ;;  %s25_s29 = sadd.s32 1, %s1486_s29   ;;  %s1958_s18 = smov %s1697_s24 }
 0x6ed   : > { %p22_p5 = scmp.ge.s32.totalorder %s25_s29, 4   ;;  %s1959_s24 = smov %s1470_s25 }
 0x6ee   : > { %s1960_s25 = smov %s1474_s26  ;;  %s1961_s26 = smov %s1958_s18 }
 0x6ef   : > { %s1962_s27 = smov %s1482_s28  ;;  %s1963_s28 = smov %s1965_s14 }
 0x6f0   :  { %24 = sbr.rel (!%p22_p5) target bundleno = 10 (0xa), region = 113 }
 0x6f7   :  { %996 = vsyncpa [#allocation6], 1 }
 0x6f8   :  { %998 = vsyncpa [#allocation6 + $0x1], 1 }
 0x6f9   :  { %999 = vsyncpa [#allocation9], 1 }
 0x6fa   :  { %1000 = vsyncpa [#allocation12], 1 }
 0x6fb   :  { %1001 = vsyncpa [#allocation7], 1 }
 0x6fc   :  { %1003 = vsyncpa [#allocation7 + $0x1], 1 }

</bundles_post_ra>
